<compile_context>
chip_gen: v7x
topology: tpu7x:2x2x1
jax: 0.10.0
libtpu: 0.0.40
codegen_flags: <defaults>
</compile_context>

<pallas_src>
import functools

import jax
import jax.numpy as jnp
from jax import lax
from jax.experimental import pallas as pl
from jax.experimental.pallas import tpu as pltpu


def _round_up(x, m):
    return (x + m - 1) // m * m


def _tile_dist(xr, xc, sq_c, row0, col0):
    """Euclidean distances for one (tr, tc) tile via the Gram trick (MXU).

    xr: (tr, D) f32 row tile, xc: (tc, D) f32 col tile,
    sq_c: (1, tc) f32 precomputed squared norms of the col tile.
    Returns (dist, row_ids, col_ids), each (tr, tc).
    """
    tr, tc = xr.shape[0], xc.shape[0]
    # xr @ xc.T without materializing a transpose (contract feature dims).
    g = lax.dot_general(xr, xc, (((1,), (1,)), ((), ())),
                        preferred_element_type=jnp.float32)          # (tr, tc)
    sq_r = jnp.sum(xr * xr, axis=1, keepdims=True)                   # (tr, 1)
    d2 = jnp.maximum(sq_r + sq_c - 2.0 * g, 0.0)

    row_ids = row0 + lax.broadcasted_iota(jnp.int32, (tr, tc), 0)
    col_ids = col0 + lax.broadcasted_iota(jnp.int32, (tr, tc), 1)
    # Exact-zero diagonal (torch: ||x - x|| == 0); also kills cancellation noise.
    d2 = jnp.where(row_ids == col_ids, 0.0, d2)
    return jnp.sqrt(d2), row_ids, col_ids


def _reduce_to_1x1(x):
    s = jnp.sum(x, axis=1, keepdims=True)
    return jnp.sum(s, axis=0, keepdims=True)


def _mmd_dist_sum_kernel(xr_ref, xc_ref, sqc_ref, out_ref, *, tr, tc, n_valid):
    """Pass 1: sum of pairwise Euclidean distances over the valid N x N block."""
    i = pl.program_id(0)
    j = pl.program_id(1)

    @pl.when((i == 0) & (j == 0))
    def _():
        out_ref[...] = jnp.zeros_like(out_ref)

    dist, row_ids, col_ids = _tile_dist(
        xr_ref[...], xc_ref[...], sqc_ref[...], i * tr, j * tc)
    valid = (row_ids < n_valid) & (col_ids < n_valid)
    dist = jnp.where(valid, dist, 0.0)
    out_ref[...] += _reduce_to_1x1(dist)


def _signed_weight(ids, n_src, n_tgt):
    """+1/n_src for source rows, -1/n_tgt for target rows, 0 for padding."""
    n_total = n_src + n_tgt
    return jnp.where(ids < n_src, 1.0 / n_src,
                     jnp.where(ids < n_total, -1.0 / n_tgt, 0.0)).astype(jnp.float32)


def _multi_bandwidth_kernel_sum(dist, kernel_mul, kernel_num):
    """sum_k exp(-dist * kernel_mul**-k) with dist already scaled by 1/bw0."""
    mul = float(kernel_mul)
    if kernel_num == 1:
        return jnp.exp(-dist)
    if mul > 1.0 and mul.is_integer():
        # EUP-cheap path: one exp, then repeated integer powers on the VPU.
        p = int(round(mul))
        base = jnp.exp(dist * (-(mul ** (-(kernel_num - 1)))))   # k = kernel_num-1
        kv = base
        cur = base
        for _ in range(1, kernel_num):
            nxt = cur
            for _ in range(p - 1):                                # cur**p
                nxt = nxt * cur
            cur = nxt
            kv = kv + cur
        return kv
    # General path: one EUP exp per bandwidth.
    kv = jnp.zeros_like(dist)
    for k in range(kernel_num):
        kv = kv + jnp.exp(dist * (-(mul ** (-k))))
    return kv


def _mmd_loss_kernel(xr_ref, xc_ref, sqc_ref, out_ref, *,
                     tr, tc, n_src, n_tgt, kernel_mul, kernel_num):
    """Pass 2: loss = sum_{ij} w_i w_j sum_k exp(-d_ij * mul^-k).

    Inputs are pre-scaled by 1/bandwidth_0 so all coefficients are static.
    """
    i = pl.program_id(0)
    j = pl.program_id(1)

    @pl.when((i == 0) & (j == 0))
    def _():
        out_ref[...] = jnp.zeros_like(out_ref)

    dist, row_ids, col_ids = _tile_dist(
        xr_ref[...], xc_ref[...], sqc_ref[...], i * tr, j * tc)

    kv = _multi_bandwidth_kernel_sum(dist, kernel_mul, kernel_num)

    w_r = _signed_weight(row_ids, n_src, n_tgt)      # zero on padded rows
    w_c = _signed_weight(col_ids, n_src, n_tgt)      # zero on padded cols
    out_ref[...] += _reduce_to_1x1(kv * (w_r * w_c))


def maximum_mean_discrepancy(source, target, *, kernel_mul=2.0, kernel_num=5,
                             fix_sigma=None, tile=128):
    source = jnp.asarray(source, jnp.float32)
    target = jnp.asarray(target, jnp.float32)
    n_src, d = source.shape
    n_tgt = target.shape[0]
    n_total = n_src + n_tgt

    total = jnp.concatenate([source, target], axis=0)            # (N, D)

    # MXU-aligned row/col tiling of the implicit N x N matrix.
    tr = min(tile, _round_up(n_total, 8))
    tc = tr
    n_pad = _round_up(n_total, tr)
    if n_pad > n_total:
        total = jnp.pad(total, ((0, n_pad - n_total), (0, 0)))
    sq = jnp.sum(total * total, axis=1).reshape(1, n_pad)        # col squared norms

    grid = (n_pad // tr, n_pad // tc)
    dim_sem = ("arbitrary", "arbitrary")     # scalar accumulation across the grid

    row_spec = pl.BlockSpec((tr, d), lambda i, j: (i, 0))
    col_spec = pl.BlockSpec((tc, d), lambda i, j: (j, 0))
    sqc_spec = pl.BlockSpec((1, tc), lambda i, j: (0, j))
    out_spec = pl.BlockSpec((1, 1), lambda i, j: (0, 0))
    out_shape = jax.ShapeDtypeStruct((1, 1), jnp.float32)

    matmul_flops = 2 * n_pad * n_pad * d
    io_bytes = 4 * (2 * n_pad * d + n_pad + 1)

    # ---- Pass 1: bandwidth from the mean pairwise distance ------------------
    if fix_sigma:
        bandwidth = jnp.float32(fix_sigma)
    else:
        dist_sum = pl.pallas_call(
            functools.partial(_mmd_dist_sum_kernel, tr=tr, tc=tc, n_valid=n_total),
            out_shape=out_shape,
            grid_spec=pltpu.PrefetchScalarGridSpec(
                num_scalar_prefetch=0,
                grid=grid,
                in_specs=[row_spec, col_spec, sqc_spec],
                out_specs=out_spec),
            compiler_params=pltpu.CompilerParams(dimension_semantics=dim_sem),
            cost_estimate=pl.CostEstimate(
                flops=matmul_flops, transcendentals=n_pad * n_pad,
                bytes_accessed=io_bytes),
        )(total, total, sq)[0, 0]
        bandwidth = dist_sum / (n_total * n_total - n_total)
    bandwidth = bandwidth / (kernel_mul ** (kernel_num // 2))

    # Fold the data-dependent base bandwidth into the points (distance is
    # positively homogeneous): dist(x / bw) == dist(x) / bw.  Pass 2 then only
    # needs static per-bandwidth coefficients mul**-k.
    inv_bw = 1.0 / bandwidth
    total_s = total * inv_bw
    sq_s = sq * (inv_bw * inv_bw)

    # ---- Pass 2: signed Gaussian-kernel sum = MMD loss -----------------------
    loss = pl.pallas_call(
        functools.partial(_mmd_loss_kernel, tr=tr, tc=tc, n_src=n_src,
                          n_tgt=n_tgt, kernel_mul=kernel_mul,
                          kernel_num=kernel_num),
        out_shape=out_shape,
        grid_spec=pltpu.PrefetchScalarGridSpec(
            num_scalar_prefetch=0,
            grid=grid,
            in_specs=[row_spec, col_spec, sqc_spec],
            out_specs=out_spec),
        compiler_params=pltpu.CompilerParams(dimension_semantics=dim_sem),
        cost_estimate=pl.CostEstimate(
            flops=matmul_flops, transcendentals=(kernel_num + 1) * n_pad * n_pad,
            bytes_accessed=io_bytes),
    )(total_s, total_s, sq_s)[0, 0]

    return loss


def _mmd_reference(source, target, kernel_mul=2.0, kernel_num=5, fix_sigma=None):
    """Pure-JAX transcription of the PyTorch module."""
    n = source.shape[0] + target.shape[0]
    total = jnp.concatenate([source, target], axis=0)
    diff = total[:, None, :] - total[None, :, :]
    l2 = jnp.sqrt(jnp.sum(diff * diff, axis=-1))
    bw = fix_sigma if fix_sigma else jnp.sum(l2) / (n * n - n)
    bw = bw / (kernel_mul ** (kernel_num // 2))
    kern = sum(jnp.exp(-l2 / (bw * kernel_mul ** i)) for i in range(kernel_num))
    b = source.shape[0]
    return (jnp.mean(kern[:b, :b]) + jnp.mean(kern[b:, b:])
            - jnp.mean(kern[:b, b:]) - jnp.mean(kern[b:, :b]))


if __name__ == "__main__":
    # Small shapes consistent with the module's forward: source/target (B, D).
    batch, feat = 16, 32

    key = jax.random.PRNGKey(0)
    k_s, k_t = jax.random.split(key)
    source = jax.random.normal(k_s, (batch, feat), jnp.float32)
    target = jax.random.normal(k_t, (batch, feat), jnp.float32) * 1.2 + 0.5

    loss = maximum_mean_discrepancy(source, target)
    loss = jax.block_until_ready(loss)

    ref = _mmd_reference(source, target)
    assert loss.shape == ()
    assert jnp.isfinite(loss)
    assert jnp.allclose(loss, ref, atol=1e-4, rtol=1e-4), (float(loss), float(ref))

    print("KERNEL_OK")
</pallas_src>

<mosaic_0001>
module attributes {stable_mosaic.version = 11 : i64} {
  func.func @_mmd_dist_sum_kernel(%arg0: i32, %arg1: i32, %arg2: memref<32x32xf32, #tpu.memory_space<vmem>>, %arg3: memref<32x32xf32, #tpu.memory_space<vmem>>, %arg4: memref<1x32xf32, #tpu.memory_space<vmem>>, %arg5: memref<1x1xf32, #tpu.memory_space<vmem>>) attributes {dimension_semantics = [#tpu.dimension_semantics<arbitrary>, #tpu.dimension_semantics<arbitrary>], iteration_bounds = array<i64: 1, 1>, scalar_prefetch = 0 : i64, scratch_operands = 0 : i64, tpu.core_type = #tpu.core_type<tc>, window_params = [{transform_indices = @transform_0, window_bounds = array<i64: 32, 32>}, {transform_indices = @transform_1, window_bounds = array<i64: 32, 32>}, {transform_indices = @transform_2, window_bounds = array<i64: 1, 32>}, {pipeline_mode = #tpu.pipeline_mode<synchronous>, transform_indices = @transform_3, window_bounds = array<i64: 1, 1>}]} {
    %c0_i32 = arith.constant 0 : i32
    %0 = arith.cmpi eq, %arg0, %c0_i32 : i32
    %c0_i32_0 = arith.constant 0 : i32
    %1 = arith.cmpi eq, %arg1, %c0_i32_0 : i32
    %2 = arith.andi %0, %1 : i1
    %3 = arith.extui %2 : i1 to i32
    %c0_i32_1 = arith.constant 0 : i32
    %4 = arith.cmpi ne, %3, %c0_i32_1 : i32
    scf.if %4 {
      %cst_21 = arith.constant 0.000000e+00 : f32
      %46 = vector.broadcast %cst_21 : f32 to vector<1x1xf32>
      %c0_22 = arith.constant 0 : index
      %c0_23 = arith.constant 0 : index
      %47 = vector.load %arg5[%c0_22, %c0_23] : memref<1x1xf32, #tpu.memory_space<vmem>>, vector<1x1xf32>
      tpu.vector_store %arg5[%c0_22, %c0_23], %46 {strides = array<i32>} : memref<1x1xf32, #tpu.memory_space<vmem>>, vector<1x1xf32>,
    } else {
    }
    %c0 = arith.constant 0 : index
    %c0_2 = arith.constant 0 : index
    %5 = vector.load %arg2[%c0, %c0_2] : memref<32x32xf32, #tpu.memory_space<vmem>>, vector<32x32xf32>
    %c0_3 = arith.constant 0 : index
    %c0_4 = arith.constant 0 : index
    %6 = vector.load %arg3[%c0_3, %c0_4] : memref<32x32xf32, #tpu.memory_space<vmem>>, vector<32x32xf32>
    %c0_5 = arith.constant 0 : index
    %c0_6 = arith.constant 0 : index
    %7 = vector.load %arg4[%c0_5, %c0_6] : memref<1x32xf32, #tpu.memory_space<vmem>>, vector<1x32xf32>
    %c32_i32 = arith.constant 32 : i32
    %8 = arith.muli %arg0, %c32_i32 : i32
    %c32_i32_7 = arith.constant 32 : i32
    %9 = arith.muli %arg1, %c32_i32_7 : i32
    %cst = arith.constant dense<0.000000e+00> : vector<32x32xf32>
    %10 = tpu.matmul %5, %6, %cst {dimension_numbers = #tpu.dot_dimension_numbers<[1], [1], [0], [0], [0, 0, 1, 0], [], []>} : vector<32x32xf32>, vector<32x32xf32>, vector<32x32xf32> -> vector<32x32xf32>
    %11 = arith.mulf %5, %5 : vector<32x32xf32>
    %cst_8 = arith.constant dense<0.000000e+00> : vector<32xf32>
    %12 = vector.multi_reduction <add>, %11, %cst_8 [1] : vector<32x32xf32> to vector<32xf32>
    %13 = vector.shape_cast %12 : vector<32xf32> to vector<32x1xf32>
    %14 = vector.broadcast %13 : vector<32x1xf32> to vector<32x32xf32>
    %15 = vector.broadcast %7 : vector<1x32xf32> to vector<32x32xf32>
    %16 = arith.addf %14, %15 : vector<32x32xf32>
    %cst_9 = arith.constant 2.000000e+00 : f32
    %17 = vector.broadcast %cst_9 : f32 to vector<32x32xf32>
    %18 = arith.mulf %17, %10 : vector<32x32xf32>
    %19 = arith.subf %16, %18 : vector<32x32xf32>
    %cst_10 = arith.constant 0.000000e+00 : f32
    %20 = vector.broadcast %cst_10 : f32 to vector<32x32xf32>
    %21 = arith.maximumf %19, %20 : vector<32x32xf32>
    %22 = tpu.iota {dimensions = array<i32: 0>} : vector<32x32xi32>
    %23 = vector.broadcast %8 : i32 to vector<32x32xi32>
    %24 = arith.addi %23, %22 : vector<32x32xi32>
    %25 = tpu.iota {dimensions = array<i32: 1>} : vector<32x32xi32>
    %26 = vector.broadcast %9 : i32 to vector<32x32xi32>
    %27 = arith.addi %26, %25 : vector<32x32xi32>
    %28 = arith.cmpi eq, %24, %27 : vector<32x32xi32>
    %cst_11 = arith.constant 0.000000e+00 : f32
    %29 = vector.broadcast %cst_11 : f32 to vector<32x32xf32>
    %30 = arith.select %28, %29, %21 : vector<32x32xi1>, vector<32x32xf32>
    %31 = math.sqrt %30 : vector<32x32xf32>
    %c32_i32_12 = arith.constant 32 : i32
    %32 = vector.broadcast %c32_i32_12 : i32 to vector<32x32xi32>
    %33 = arith.cmpi slt, %24, %32 : vector<32x32xi32>
    %c32_i32_13 = arith.constant 32 : i32
    %34 = vector.broadcast %c32_i32_13 : i32 to vector<32x32xi32>
    %35 = arith.cmpi slt, %27, %34 : vector<32x32xi32>
    %36 = arith.andi %33, %35 : vector<32x32xi1>
    %cst_14 = arith.constant 0.000000e+00 : f32
    %37 = vector.broadcast %cst_14 : f32 to vector<32x32xf32>
    %38 = arith.select %36, %31, %37 : vector<32x32xi1>, vector<32x32xf32>
    %c0_15 = arith.constant 0 : index
    %c0_16 = arith.constant 0 : index
    %39 = vector.load %arg5[%c0_15, %c0_16] : memref<1x1xf32, #tpu.memory_space<vmem>>, vector<1x1xf32>
    %cst_17 = arith.constant dense<0.000000e+00> : vector<32xf32>
    %40 = vector.multi_reduction <add>, %38, %cst_17 [1] : vector<32x32xf32> to vector<32xf32>
    %41 = vector.shape_cast %40 : vector<32xf32> to vector<32x1xf32>
    %cst_18 = arith.constant dense<0.000000e+00> : vector<1xf32>
    %42 = vector.multi_reduction <add>, %41, %cst_18 [0] : vector<32x1xf32> to vector<1xf32>
    %43 = vector.shape_cast %42 : vector<1xf32> to vector<1x1xf32>
    %44 = arith.addf %39, %43 : vector<1x1xf32>
    %c0_19 = arith.constant 0 : index
    %c0_20 = arith.constant 0 : index
    %45 = vector.load %arg5[%c0_19, %c0_20] : memref<1x1xf32, #tpu.memory_space<vmem>>, vector<1x1xf32>
    tpu.vector_store %arg5[%c0_19, %c0_20], %44 {strides = array<i32>} : memref<1x1xf32, #tpu.memory_space<vmem>>, vector<1x1xf32>,
    return
  }
  func.func @transform_0(%arg0: i32, %arg1: i32) -> (i32, i32) {
    %c0_i32 = arith.constant 0 : i32
    %c0_i32_0 = arith.constant 0 : i32
    return %arg0, %c0_i32 : i32, i32
  }
  func.func @transform_1(%arg0: i32, %arg1: i32) -> (i32, i32) {
    %c0_i32 = arith.constant 0 : i32
    %c0_i32_0 = arith.constant 0 : i32
    return %arg1, %c0_i32 : i32, i32
  }
  func.func @transform_2(%arg0: i32, %arg1: i32) -> (i32, i32) {
    %c0_i32 = arith.constant 0 : i32
    %c0_i32_0 = arith.constant 0 : i32
    return %c0_i32, %arg1 : i32, i32
  }
  func.func @transform_3(%arg0: i32, %arg1: i32) -> (i32, i32) {
    %c0_i32 = arith.constant 0 : i32
    %c0_i32_0 = arith.constant 0 : i32
    %c0_i32_1 = arith.constant 0 : i32
    return %c0_i32, %c0_i32_0 : i32, i32
  }
}

</mosaic_0001>

<bundles_post_ra>
// kernel: tpu_custom_call.1
= control target key start
LH: loop header
LB: loop body
LE: loop exit
PB: predicated region body
PF: predicated region fallthrough
CT: control target
= control target key end

     0   :  { %8 = vsyncpa [#allocation3], 0  ;;  %s565_s0 = inlined_call_operand.hbm [shape: f32[32,32], index: 0, kind: input, shape index: {}]   ;;  %s566_s1 = inlined_call_operand.hbm [shape: f32[32,32], index: 1, kind: input, shape index: {}]   ;;  %s567_s2 = inlined_call_operand.vmem [shape: f32[1,32], index: 2, kind: input, shape index: {}]   ;;  %s568_s3 = inlined_call_operand.hbm [shape: f32[1,1], index: 3, kind: output, shape index: {}]  }
   0x1   :  { %9 = vsyncpa [#allocation6], 0 }
   0x2   :  { %10 = vsyncpa [#allocation4], 0  ;;  %s447_s12 = smov [#allocation2]   ;;  %s375_s16 = scalar_lea.hbm %s565_s0, 512 }
   0x3   :  { %s16_s13 = sshll.u32 %s447_s12, 4  ;;  %p376_p0 = scmp.ne.s32.totalorder %s565_s0, %s375_s16  ;;  %s17_s13 = int_to_ptr.vmem [resolvable:$true] %s16_s13 }
   0x4   :  { %p379_p1 = scmp.lt.u32.totalorder %s375_s16, %s565_s0 }
   0x6   :  { %p381_p2 = pnand %p379_p1, %p376_p0 }
   0x8   :  { %384 = shalt.err (!%p381_p2)
}
   0x9   :  { %s385_s21 = scalar_lea.vmem %s17_s13, 512  ;;  %p390_p4 = scmp.lt.s32.totalorder %s17_s13, %s17_s13 }
   0xa   :  { %p386_p3 = scmp.ne.s32.totalorder %s17_s13, %s385_s21  ;;  %p391_p5 = scmp.lt.s32.totalorder %s385_s21, %s385_s21 }
   0xc   :  { %p392_p6 = por %p391_p5, %p390_p4 }
   0xe   :  { %p393_p7 = pnand %p392_p6, %p386_p3 }
  0x10   :  { %396 = shalt.err (!%p393_p7)
}
  0x11   :  { %s448_s22 = smov 128   ;;  %s449_s23 = smov 8  }
  0x12   :  { %22 = dma.hbm_to_vmem [thread:$0]  %s565_s0, 512, %s17_s13, [#allocation3], %s448_s22, %s448_s22, %s449_s23  }
  0x13   :  { %s450_s26 = smov [#allocation5]   ;;  %s397_s30 = scalar_lea.hbm %s566_s1, 512 }
  0x14   :  { %s28_s27 = sshll.u32 %s450_s26, 4  ;;  %p398_p8 = scmp.ne.s32.totalorder %s566_s1, %s397_s30  ;;  %s29_s27 = int_to_ptr.vmem [resolvable:$true] %s28_s27 }
  0x15   :  { %p401_p9 = scmp.lt.u32.totalorder %s397_s30, %s566_s1 }
  0x17   :  { %p403_p10 = pnand %p401_p9, %p398_p8 }
  0x19   :  { %406 = shalt.err (!%p403_p10)
}
  0x1a   :  { %s407_s8 = scalar_lea.vmem %s29_s27, 512  ;;  %p412_p12 = scmp.lt.s32.totalorder %s29_s27, %s29_s27 }
  0x1b   :  { %p408_p11 = scmp.ne.s32.totalorder %s29_s27, %s407_s8  ;;  %p413_p13 = scmp.lt.s32.totalorder %s407_s8, %s407_s8 }
  0x1d   :  { %p414_p0 = por %p413_p13, %p412_p12 }
  0x1f   :  { %p415_p1 = pnand %p414_p0, %p408_p11 }
  0x21   :  { %418 = shalt.err (!%p415_p1)
}
  0x22   :  { %34 = dma.hbm_to_vmem [thread:$0]  %s566_s1, 512, %s29_s27, [#allocation6], %s448_s22, %s448_s22, %s449_s23  }
  0x23   :  { %441 = dma.done.wait [#allocation3], 512  }
  0x24   :  { %442 = vsyncadd [#allocation3], 4294966784 }
  0x25   :  { %443 = dma.done.wait [#allocation6], 512  }
  0x26   :  { %444 = vsyncadd [#allocation6], 4294966784  ;;  %vm62_vm0 = vcmask 261120   ;;  %v55_v1 = vld [vmem:[#allocation5] sm:$0xff]  ;;  %v56_v2 = vld [vmem:[#allocation5 + $0x8] sm:$0xff]  ;;  %v210_v21 = vlaneseq  ;;  %vm49_vm15 = vcmask 0  }
  0x27   :  { %vm499_vm1 = vmpackc.low %vm62_vm0, %vm62_vm0  ;;  %v57_v3 = vld [vmem:[#allocation5 + $0x10] sm:$0xff]  ;;  %v345_v4 = vpack.c.bf16 %v56_v2, %v55_v1  ;;  %v58_v5 = vld [vmem:[#allocation5 + $0x18] sm:$0xff] }
  0x28   :  { %v51_v6 = vld [vmem:[#allocation2] sm:$0xff]  ;;  %v53_v7 = vld [vmem:[#allocation2 + $0x10] sm:$0xff]  ;;  %v351_v8 = vpack.c.bf16 %v58_v5, %v57_v3  ;;  %v52_v11 = vld [vmem:[#allocation2 + $0x8] sm:$0xff]  ;;  %v211_v24 = vshrl.u32 %v210_v21, 7  ;;  %v530_v31 = vand.u32 127, %v210_v21 }
  0x29   :  { %339 = vmatprep.mubr.msk.f32.mxu0 %vm62_vm0, %v51_v6  ;;  %v172_v9 = vmul.f32 %v51_v6, %v51_v6  ;;  %342 = vmatprep.mubr.msk.f32.mxu1 %vm62_vm0, %v53_v7  ;;  %v174_v10 = vmul.f32 %v53_v7, %v53_v7  ;;  %v54_v12 = vld [vmem:[#allocation2 + $0x18] sm:$0xff]  ;;  %v173_v14 = vmul.f32 %v52_v11, %v52_v11  ;;  %v322_v22 = vld [vmem:[%s567_s2] ss:$0 sm:$0xff]  ;;  %s452_s2 = smov [#allocation7]  }
  0x2a   :  { %347 = vmatprep.subr.msk.bf16.mxu0 %vm499_vm1, %v345_v4  ;;  %357 = vmatprep.subr.msk.bf16.mxu1 %vm499_vm1, %v345_v4  ;;  %v175_v13 = vmul.f32 %v54_v12, %v54_v12  ;;  %v214_v30 = vadd.s32 24, %v211_v24  ;;  %v212_v33 = vadd.s32 8, %v211_v24  ;;  %v213_v38 = vadd.s32 16, %v211_v24  ;;  %s304_s11 = sshll.u32 %s452_s2, 4  ;;  %s305_s11 = int_to_ptr.vmem [resolvable:$true] %s304_s11 }
  0x2b   :  { %350 = vmatpush3.bf16.xpose.msk.msra.mxu0 %vm499_vm1, %v345_v4  ;;  %359 = vmatpush3.bf16.xpose.msk.msra.mxu1 %vm499_vm1, %v345_v4  ;;  %v182_v15 = vsel %vm62_vm0, %v174_v10, 0.0  ;;  %v176_v16 = vsel %vm62_vm0, %v172_v9, 0.0  ;;  %v179_v18 = vsel %vm62_vm0, %v173_v14, 0.0  ;;  %vm224_vm4 = vcmp.eq.s32.totalorder %v211_v24, %v530_v31  ;;  %s419_s12 = scalar_lea.vmem %s305_s11, 16  ;;  %s423_s13 = scalar_lea.vmem %s305_s11, 32 }
  0x2c   :  { %353 = vmatprep.subr.msk.bf16.mxu0 %vm499_vm1, %v351_v8  ;;  %358 = vmatprep.subr.msk.bf16.mxu1 %vm499_vm1, %v351_v8  ;;  %v185_v17 = vsel %vm62_vm0, %v175_v13, 0.0  ;;  %vm227_vm2 = vcmp.eq.s32.totalorder %v214_v30, %v530_v31  ;;  %vm225_vm3 = vcmp.eq.s32.totalorder %v212_v33, %v530_v31  ;;  %vm226_vm5 = vcmp.eq.s32.totalorder %v213_v38, %v530_v31  ;;  %p420_p2 = scmp.ne.s32.totalorder %s305_s11, %s419_s12  ;;  %p424_p3 = scmp.lt.s32.totalorder %s305_s11, %s305_s11 }
  0x2d   :  { %183 = vadd.xlane.f32.xlu1 %v182_v15  ;;  %177 = vadd.xlane.f32.xlu0 %v176_v16  ;;  %vm264_vm6 = vcmp.lt.s32.totalorder %v530_v31, 32  ;;  %p425_p4 = scmp.lt.s32.totalorder %s423_s13, %s419_s12 }
  0x2f   :  { %p426_p5 = por %p425_p4, %p424_p3 }
  0x31   :  { %186 = vadd.xlane.f32.xlu1 %v185_v17  ;;  %180 = vadd.xlane.f32.xlu0 %v179_v18  ;;  %v451_v18 = vmov 0.0   ;;  %p427_p6 = pnand %p426_p5, %p420_p2 }
  0x32   :  { %50 = vst.msk [vmem:[#allocation7] sm:$0x1] %vm49_vm15, %v451_v18 }
  0x33   :  { %356 = vmatpush3.bf16.xpose.msk.msra.mxu0 %vm499_vm1, %v351_v8  ;;  %360 = vmatpush3.bf16.xpose.msk.msra.mxu1 %vm499_vm1, %v351_v8 }
  0x39   :  { %v273_v31 = vld [vmem:[#allocation7] sm:$0x1] }
  0x3a   :  { %340 = vmatmul.mubr.msk.f32.vlgmr.msra.gmra.mrb[0].mxu0 %vm62_vm0, %v52_v11  ;;  %343 = vmatmul.mubr.msk.f32.vlgmr.msra.gmra.mrb[0].mxu1 %vm62_vm0, %v54_v12 }
  0xba   :  { %v184_v19 = vpop.xlane.xlu1 %183  ;;  %v178_v20 = vpop.xlane.xlu0 %177 }
  0xbb   :  { %v196_v28 = vadd.f32 %v322_v22, %v184_v19  ;;  %v194_v39 = vadd.f32 %v322_v22, %v178_v20 }
  0xbe   :  { %v187_v23 = vpop.xlane.xlu1 %186  ;;  %v181_v25 = vpop.xlane.xlu0 %180 }
  0xbf   :  { %v197_v26 = vadd.f32 %v322_v22, %v187_v23  ;;  %v195_v27 = vadd.f32 %v322_v22, %v181_v25 }
 0x10d   :  { %v344_v29 = vpop.f32.mrb[0].mxu1  ;;  %v341_v32 = vpop.f32.mrb[0].mxu0 }
 0x10e   :  { %v201_v34 = vmul.f32 2.0, %v344_v29  ;;  %v199_v35 = vmul.f32 2.0, %v341_v32  ;;  %v153_v36 = vpop.f32.mrb[1].mxu0  ;;  %v163_v37 = vpop.f32.mrb[1].mxu1 }
 0x10f   :  { %v198_v40 = vmul.f32 2.0, %v153_v36  ;;  %v200_v41 = vmul.f32 2.0, %v163_v37 }
 0x110   :  { %v205_v42 = vsub.f32 %v197_v26, %v201_v34  ;;  %v203_v43 = vsub.f32 %v195_v27, %v199_v35 }
 0x111   :  { %v202_v44 = vsub.f32 %v194_v39, %v198_v40  ;;  %v204_v45 = vsub.f32 %v196_v28, %v200_v41 }
 0x112   :  { %v209_v46 = vmax.f32 %v205_v42, 0.0  ;;  %v207_v47 = vmax.f32 %v203_v43, 0.0 }
 0x113   :  { %v206_v48 = vmax.f32 %v202_v44, 0.0  ;;  %v208_v49 = vmax.f32 %v204_v45, 0.0 }
 0x114   :  { %v231_v50 = vsel %vm227_vm2, 0.0, %v209_v46  ;;  %v229_v51 = vsel %vm225_vm3, 0.0, %v207_v47 }
 0x115   :  { %367 = vrsqrt.f32 %v231_v50  ;;  %v228_v52 = vsel %vm224_vm4, 0.0, %v206_v48  ;;  %v230_v53 = vsel %vm226_vm5, 0.0, %v208_v49  ;;  %vm241_vm7 = vcmp.eq.f32.partialorder %v229_v51, inf }
 0x116   :  { %369 = vrsqrt.f32 %v229_v51  ;;  %vm243_vm8 = vcmp.eq.f32.partialorder %v229_v51, 0.0  ;;  %v244_v56 = vand.u32 2147483648, %v229_v51  ;;  %vm234_vm9 = vcmp.eq.f32.partialorder %v228_v52, inf }
 0x117   :  { %371 = vrsqrt.f32 %v228_v52  ;;  %vm236_vm10 = vcmp.eq.f32.partialorder %v228_v52, 0.0  ;;  %vm255_vm11 = vcmp.eq.f32.partialorder %v231_v50, inf  ;;  %v237_v62 = vand.u32 2147483648, %v228_v52 }
 0x118   :  { %373 = vrsqrt.f32 %v230_v53  ;;  %v258_v0 = vand.u32 2147483648, %v231_v50  ;;  %vm257_vm12 = vcmp.eq.f32.partialorder %v231_v50, 0.0  ;;  %vm248_vm13 = vcmp.eq.f32.partialorder %v230_v53, inf }
 0x119   :  { %v251_v6 = vand.u32 2147483648, %v230_v53  ;;  %vm250_vm14 = vcmp.eq.f32.partialorder %v230_v53, 0.0 }
 0x11f   :  { %v368_v54 = vpop.eup %367 }
 0x120   :  { %v370_v55 = vpop.eup %369  ;;  %v254_v57 = vmul.f32 %v368_v54, %v231_v50 }
 0x121   :  { %v372_v58 = vpop.eup %371  ;;  %v240_v59 = vmul.f32 %v370_v55, %v229_v51 }
 0x122   :  { %v374_v60 = vpop.eup %373  ;;  %v233_v61 = vmul.f32 %v372_v58, %v228_v52  ;;  %v256_v63 = vsel %vm255_vm11, %v231_v50, %v254_v57 }
 0x123   :  { %v242_v1 = vsel %vm241_vm7, %v229_v51, %v240_v59  ;;  %v247_v2 = vmul.f32 %v374_v60, %v230_v53  ;;  %v259_v5 = vsel %vm257_vm12, %v258_v0, %v256_v63 }
 0x124   :  { %v245_v3 = vsel %vm243_vm8, %v244_v56, %v242_v1  ;;  %v235_v4 = vsel %vm234_vm9, %v228_v52, %v233_v61  ;;  %v272_v14 = vsel %vm264_vm6, %v259_v5, 0.0 }
 0x125   :  { %v270_v7 = vsel %vm264_vm6, %v245_v3, 0.0  ;;  %v238_v8 = vsel %vm236_vm10, %v237_v62, %v235_v4  ;;  %v249_v9 = vsel %vm248_vm13, %v230_v53, %v247_v2  ;;  %v283_v16 = vsel %vm62_vm0, %v272_v14, 0.0 }
 0x126   :  { %v277_v10 = vsel %vm62_vm0, %v270_v7, 0.0  ;;  %v269_v11 = vsel %vm264_vm6, %v238_v8, 0.0  ;;  %v252_v12 = vsel %vm250_vm14, %v251_v6, %v249_v9 }
 0x127   :  { %278 = vadd.xlane.f32.xlu1 %v277_v10  ;;  %v274_v13 = vsel %vm62_vm0, %v269_v11, 0.0  ;;  %v271_v15 = vsel %vm264_vm6, %v252_v12, 0.0 }
 0x128   :  { %275 = vadd.xlane.f32.xlu0 %v274_v13  ;;  %v280_v17 = vsel %vm62_vm0, %v271_v15, 0.0 }
 0x12b   :  { %284 = vadd.xlane.f32.xlu1 %v283_v16 }
 0x12c   :  { %281 = vadd.xlane.f32.xlu0 %v280_v17 }
 0x1b4   :  { %v279_v19 = vpop.xlane.xlu1 %278 }
 0x1b5   :  { %v276_v20 = vpop.xlane.xlu0 %275 }
 0x1b6   :  { %v286_v21 = vadd.f32 %v279_v19, %v276_v20 }
 0x1b8   :  { %v285_v24 = vpop.xlane.xlu1 %284 }
 0x1b9   :  { %v282_v22 = vpop.xlane.xlu0 %281 }
 0x1ba   :  { %v287_v23 = vadd.f32 %v286_v21, %v282_v22 }
 0x1bc   :  { %v288_v25 = vadd.f32 %v287_v23, %v285_v24 }
 0x1be   :  { %v289_v26 = vrot.slane %v288_v25, 4 }
 0x1c0   :  { %v290_v27 = vadd.f32 %v289_v26, %v288_v25 }
 0x1c2   :  { %v291_v28 = vrot.slane %v290_v27, 2 }
 0x1c4   :  { %v292_v29 = vadd.f32 %v291_v28, %v290_v27 }
 0x1c6   :  { %v293_v30 = vrot.slane %v292_v29, 1 }
 0x1c8   :  { %v294_v32 = vadd.f32 %v293_v30, %v292_v29 }
 0x1ca   :  { %v295_v33 = vadd.f32 %v294_v32, %v273_v31 }
 0x1cc   :  { %297 = vst.msk [vmem:[#allocation7] sm:$0x1] %vm49_vm15, %v295_v33 }
 0x1cd   :  { %430 = shalt.err (!%p427_p6)
}
 0x1ce   :  { %s431_s16 = scalar_lea.hbm %s568_s3, 16 }
 0x1cf   :  { %p432_p7 = scmp.ne.s32.totalorder %s568_s3, %s431_s16  ;;  %p435_p8 = scmp.lt.u32.totalorder %s431_s16, %s568_s3 }
 0x1d1   :  { %p437_p9 = pnand %p435_p8, %p432_p7 }
 0x1d3   :  { %440 = shalt.err (!%p437_p9)
}
 0x1d4   :  { %307 = dma.vmem_to_hbm [thread:$0]  %s305_s11, 16, %s568_s3, [#allocation4]  }
 0x1d5   :  { %445 = dma.done.wait [#allocation4], 16  }
 0x1d6   :  { %446 = vsyncadd [#allocation4], 4294967280 }
 0x1d7   :  { %311 = vsyncpa [#allocation3], 1 }
 0x1d8   :  { %312 = vsyncpa [#allocation6], 1 }
 0x1d9   :  { %313 = vsyncpa [#allocation4], 1 }

</bundles_post_ra>
